<compile_context>
chip_gen: v6e
topology: v6e:2x2x1
jax: 0.10.0
libtpu: 0.0.40
codegen_flags: <defaults>
</compile_context>

<pallas_src>
import functools
import math

import jax
import jax.numpy as jnp
from jax import lax
from jax.experimental import pallas as pl
from jax.experimental.pallas import tpu as pltpu


# ----------------------------- config ---------------------------------------
class Config:
    input_dim = 32
    hidden_dim = 32
    risk_factors = 4


CFG = Config()
OUT_PAD = 128  # lane-dense output slab width

NET_ORDER = ['mean_irr', 'mean_multiple', 'mean_risk',
             'var_irr', 'var_multiple', 'var_risk', 'corr']


def _softplus(z):
    # numerically-stable softplus, identical formula used in kernel and reference
    return jnp.maximum(z, 0.0) + jnp.log1p(jnp.exp(-jnp.abs(z)))


# ----------------------------- Pallas kernel ---------------------------------
def bayes_kernel(var_start, var_end, corr_end,
                 x_ref, w1_ref, b1_ref, w2_ref, b2_ref, w3_ref, b3_ref, out_ref):
    # layout:
    #   x_ref  (B, D)
    #   w1_ref (D, L1)      concatenated first-layer weights of all 7 nets
    #   w2_ref (L1, L2)     block-diagonal second-layer weights
    #   w3_ref (L2, 128)    block-diagonal third-layer weights, lane-padded
    #   b*_ref (1, ·)
    #   out_ref (B, 128)    cols [0, var_start)      -> means (raw)
    #                       cols [var_start, var_end)-> variances (softplus + 1e-6)
    #                       cols [var_end, corr_end) -> correlations (tanh)
    #                       cols >= corr_end         -> zero padding
    x = x_ref[...]
    z1 = jnp.maximum(
        jnp.dot(x, w1_ref[...], preferred_element_type=jnp.float32) + b1_ref[...], 0.0)
    z2 = jnp.maximum(
        jnp.dot(z1, w2_ref[...], preferred_element_type=jnp.float32) + b2_ref[...], 0.0)
    z3 = jnp.dot(z2, w3_ref[...], preferred_element_type=jnp.float32) + b3_ref[...]

    col = lax.broadcasted_iota(jnp.int32, z3.shape, 1)
    var_mask = (col >= var_start) & (col < var_end)
    corr_mask = (col >= var_end) & (col < corr_end)
    var_vals = _softplus(z3) + 1e-6
    corr_vals = jnp.tanh(z3)
    out_ref[...] = jnp.where(var_mask, var_vals,
                             jnp.where(corr_mask, corr_vals, z3))


# ----------------------------- parameters ------------------------------------
def init_params(key, cfg):
    """Per-network weights stored PyTorch-style but pre-transposed to (in, out)."""
    D, Hd, R = cfg.input_dim, cfg.hidden_dim, cfg.risk_factors
    keys = jax.random.split(key, 6 * len(NET_ORDER))
    ki = 0

    def rnd(k, shape, scale=0.1):
        return (scale * jax.random.normal(k, shape)).astype(jnp.float32)

    def make_net(in_dim, h1, h2, out_dim):
        nonlocal ki
        n = {'w1': rnd(keys[ki + 0], (in_dim, h1)), 'b1': rnd(keys[ki + 1], (h1,)),
             'w2': rnd(keys[ki + 2], (h1, h2)),     'b2': rnd(keys[ki + 3], (h2,)),
             'w3': rnd(keys[ki + 4], (h2, out_dim)), 'b3': rnd(keys[ki + 5], (out_dim,))}
        ki += 6
        return n

    nets = {}
    for name in NET_ORDER:
        if name == 'corr':
            nets[name] = make_net(D, Hd, Hd // 2, 3)
        else:
            out_dim = R if name.endswith('risk') else 1
            nets[name] = make_net(D, D, D // 2, out_dim)
    return nets


def pack_params(nets, out_pad=OUT_PAD):
    """Pack 7 tiny MLPs into 3 lane-dense (concatenated / block-diagonal) layers."""
    ordered = [nets[name] for name in NET_ORDER]
    h1_sizes = [n['w1'].shape[1] for n in ordered]
    h2_sizes = [n['w2'].shape[1] for n in ordered]
    out_sizes = [n['w3'].shape[1] for n in ordered]
    L1, L2, OUT = sum(h1_sizes), sum(h2_sizes), sum(out_sizes)
    assert OUT <= out_pad

    w1 = jnp.concatenate([n['w1'] for n in ordered], axis=1)              # (D, L1)
    b1 = jnp.concatenate([n['b1'] for n in ordered]).reshape(1, L1)

    w2 = jnp.zeros((L1, L2), jnp.float32)
    b2 = jnp.concatenate([n['b2'] for n in ordered]).reshape(1, L2)
    r, c = 0, 0
    for n, s1, s2 in zip(ordered, h1_sizes, h2_sizes):
        w2 = w2.at[r:r + s1, c:c + s2].set(n['w2'])
        r += s1
        c += s2

    w3 = jnp.zeros((L2, out_pad), jnp.float32)
    b3 = jnp.zeros((1, out_pad), jnp.float32)
    r, c = 0, 0
    for n, s2, s3 in zip(ordered, h2_sizes, out_sizes):
        w3 = w3.at[r:r + s2, c:c + s3].set(n['w3'])
        b3 = b3.at[0, c:c + s3].set(n['b3'])
        r += s2
        c += s3

    return (w1, b1, w2, b2, w3, b3)


# ----------------------------- forward ----------------------------------------
def bayesian_forward(packed, x, cfg, out_pad=OUT_PAD):
    B = x.shape[0]
    R = cfg.risk_factors
    var_start, var_end, corr_end = 2 + R, 4 + 2 * R, 7 + 2 * R
    w1, b1, w2, b2, w3, b3 = packed

    kernel = functools.partial(bayes_kernel, var_start, var_end, corr_end)
    out = pl.pallas_call(
        kernel,
        out_shape=jax.ShapeDtypeStruct((B, out_pad), jnp.float32),
        in_specs=[pl.BlockSpec(memory_space=pltpu.MemorySpace.VMEM)] * 7,
        out_specs=pl.BlockSpec(memory_space=pltpu.MemorySpace.VMEM),
    )(x, w1, b1, w2, b2, w3, b3)

    means = {'irr': out[:, 0:1],
             'multiple': out[:, 1:2],
             'risk': out[:, 2:2 + R]}
    variances = {'irr': out[:, 2 + R:3 + R],
                 'multiple': out[:, 3 + R:4 + R],
                 'risk': out[:, 4 + R:4 + 2 * R]}
    correlations = out[:, 4 + 2 * R:7 + 2 * R]
    return means, variances, correlations


# ----------------------------- pure-JAX reference ------------------------------
def reference_forward(nets, x, cfg):
    def run_mlp(n, x):
        z = jnp.maximum(x @ n['w1'] + n['b1'], 0.0)   # Dropout(0.1) eval: identity
        z = jnp.maximum(z @ n['w2'] + n['b2'], 0.0)
        return z @ n['w3'] + n['b3']

    names = ['irr', 'multiple', 'risk']
    means = {nm: run_mlp(nets['mean_' + nm], x) for nm in names}
    variances = {nm: _softplus(run_mlp(nets['var_' + nm], x)) + 1e-6 for nm in names}
    correlations = jnp.tanh(run_mlp(nets['corr'], x))
    return means, variances, correlations


# ----------------------------- main --------------------------------------------
if __name__ == "__main__":
    cfg = CFG
    key = jax.random.PRNGKey(0)
    kp, kx = jax.random.split(key, 2)

    nets = init_params(kp, cfg)
    packed = pack_params(nets)

    B = 2
    x = jax.random.normal(kx, (B, cfg.input_dim), jnp.float32)

    means, variances, correlations = bayesian_forward(packed, x, cfg)
    means = jax.tree_util.tree_map(jax.block_until_ready, means)
    variances = jax.tree_util.tree_map(jax.block_until_ready, variances)
    correlations = jax.block_until_ready(correlations)

    ref_means, ref_vars, ref_corr = reference_forward(nets, x, cfg)

    # shape checks
    assert means['irr'].shape == (B, 1)
    assert means['multiple'].shape == (B, 1)
    assert means['risk'].shape == (B, cfg.risk_factors)
    assert variances['risk'].shape == (B, cfg.risk_factors)
    assert correlations.shape == (B, 3)

    # numeric checks vs pure-JAX reference
    max_err = 0.0
    for nm in ['irr', 'multiple', 'risk']:
        max_err = max(max_err, float(jnp.max(jnp.abs(means[nm] - ref_means[nm]))))
        max_err = max(max_err, float(jnp.max(jnp.abs(variances[nm] - ref_vars[nm]))))
    max_err = max(max_err, float(jnp.max(jnp.abs(correlations - ref_corr))))
    assert max_err < 1e-3, f"mismatch vs pure-JAX reference: {max_err}"
    # variances must be strictly positive (softplus + 1e-6)
    for nm in ['irr', 'multiple', 'risk']:
        assert bool(jnp.all(variances[nm] > 0.0))

    print("KERNEL_OK")
</pallas_src>

<mosaic_0001>
module attributes {stable_mosaic.version = 11 : i64} {
  func.func @bayes_kernel(%arg0: memref<2x32xf32, #tpu.memory_space<vmem>>, %arg1: memref<32x224xf32, #tpu.memory_space<vmem>>, %arg2: memref<1x224xf32, #tpu.memory_space<vmem>>, %arg3: memref<224x112xf32, #tpu.memory_space<vmem>>, %arg4: memref<1x112xf32, #tpu.memory_space<vmem>>, %arg5: memref<112x128xf32, #tpu.memory_space<vmem>>, %arg6: memref<1x128xf32, #tpu.memory_space<vmem>>, %arg7: memref<2x128xf32, #tpu.memory_space<vmem>>) attributes {dimension_semantics = [], scalar_prefetch = 0 : i64, scratch_operands = 0 : i64, tpu.core_type = #tpu.core_type<tc>} {
    %c0 = arith.constant 0 : index
    %c0_0 = arith.constant 0 : index
    %0 = vector.load %arg0[%c0, %c0_0] : memref<2x32xf32, #tpu.memory_space<vmem>>, vector<2x32xf32>
    %c0_1 = arith.constant 0 : index
    %c0_2 = arith.constant 0 : index
    %1 = vector.load %arg1[%c0_1, %c0_2] : memref<32x224xf32, #tpu.memory_space<vmem>>, vector<32x224xf32>
    %cst = arith.constant dense<0.000000e+00> : vector<2x224xf32>
    %2 = tpu.matmul %0, %1, %cst {dimension_numbers = #tpu.dot_dimension_numbers<[1], [0], [0], [1], [0, 0, 1, 1], [], []>} : vector<2x32xf32>, vector<32x224xf32>, vector<2x224xf32> -> vector<2x224xf32>
    %c0_3 = arith.constant 0 : index
    %c0_4 = arith.constant 0 : index
    %3 = vector.load %arg2[%c0_3, %c0_4] : memref<1x224xf32, #tpu.memory_space<vmem>>, vector<1x224xf32>
    %4 = vector.broadcast %3 : vector<1x224xf32> to vector<2x224xf32>
    %5 = arith.addf %2, %4 : vector<2x224xf32>
    %cst_5 = arith.constant 0.000000e+00 : f32
    %6 = vector.broadcast %cst_5 : f32 to vector<2x224xf32>
    %7 = arith.maximumf %5, %6 : vector<2x224xf32>
    %c0_6 = arith.constant 0 : index
    %c0_7 = arith.constant 0 : index
    %8 = vector.load %arg3[%c0_6, %c0_7] : memref<224x112xf32, #tpu.memory_space<vmem>>, vector<224x112xf32>
    %cst_8 = arith.constant dense<0.000000e+00> : vector<2x112xf32>
    %9 = tpu.matmul %7, %8, %cst_8 {dimension_numbers = #tpu.dot_dimension_numbers<[1], [0], [0], [1], [0, 0, 1, 1], [], []>} : vector<2x224xf32>, vector<224x112xf32>, vector<2x112xf32> -> vector<2x112xf32>
    %c0_9 = arith.constant 0 : index
    %c0_10 = arith.constant 0 : index
    %10 = vector.load %arg4[%c0_9, %c0_10] : memref<1x112xf32, #tpu.memory_space<vmem>>, vector<1x112xf32>
    %11 = vector.broadcast %10 : vector<1x112xf32> to vector<2x112xf32>
    %12 = arith.addf %9, %11 : vector<2x112xf32>
    %cst_11 = arith.constant 0.000000e+00 : f32
    %13 = vector.broadcast %cst_11 : f32 to vector<2x112xf32>
    %14 = arith.maximumf %12, %13 : vector<2x112xf32>
    %c0_12 = arith.constant 0 : index
    %c0_13 = arith.constant 0 : index
    %15 = vector.load %arg5[%c0_12, %c0_13] : memref<112x128xf32, #tpu.memory_space<vmem>>, vector<112x128xf32>
    %cst_14 = arith.constant dense<0.000000e+00> : vector<2x128xf32>
    %16 = tpu.matmul %14, %15, %cst_14 {dimension_numbers = #tpu.dot_dimension_numbers<[1], [0], [0], [1], [0, 0, 1, 1], [], []>} : vector<2x112xf32>, vector<112x128xf32>, vector<2x128xf32> -> vector<2x128xf32>
    %c0_15 = arith.constant 0 : index
    %c0_16 = arith.constant 0 : index
    %17 = vector.load %arg6[%c0_15, %c0_16] : memref<1x128xf32, #tpu.memory_space<vmem>>, vector<1x128xf32>
    %18 = vector.broadcast %17 : vector<1x128xf32> to vector<2x128xf32>
    %19 = arith.addf %16, %18 : vector<2x128xf32>
    %20 = tpu.iota {dimensions = array<i32: 1>} : vector<2x128xi32>
    %c6_i32 = arith.constant 6 : i32
    %21 = vector.broadcast %c6_i32 : i32 to vector<2x128xi32>
    %22 = arith.cmpi sge, %20, %21 : vector<2x128xi32>
    %c12_i32 = arith.constant 12 : i32
    %23 = vector.broadcast %c12_i32 : i32 to vector<2x128xi32>
    %24 = arith.cmpi slt, %20, %23 : vector<2x128xi32>
    %25 = arith.andi %22, %24 : vector<2x128xi1>
    %c12_i32_17 = arith.constant 12 : i32
    %26 = vector.broadcast %c12_i32_17 : i32 to vector<2x128xi32>
    %27 = arith.cmpi sge, %20, %26 : vector<2x128xi32>
    %c15_i32 = arith.constant 15 : i32
    %28 = vector.broadcast %c15_i32 : i32 to vector<2x128xi32>
    %29 = arith.cmpi slt, %20, %28 : vector<2x128xi32>
    %30 = arith.andi %27, %29 : vector<2x128xi1>
    %cst_18 = arith.constant 0.000000e+00 : f32
    %31 = vector.broadcast %cst_18 : f32 to vector<2x128xf32>
    %32 = arith.maximumf %19, %31 : vector<2x128xf32>
    %33 = math.absf %19 : vector<2x128xf32>
    %cst_19 = arith.constant 0.000000e+00 : f32
    %34 = vector.broadcast %cst_19 : f32 to vector<2x128xf32>
    %35 = arith.subf %34, %33 : vector<2x128xf32>
    %36 = math.exp %35 : vector<2x128xf32>
    %37 = math.log1p %36 : vector<2x128xf32>
    %38 = arith.addf %32, %37 : vector<2x128xf32>
    %cst_20 = arith.constant 9.99999997E-7 : f32
    %39 = vector.broadcast %cst_20 : f32 to vector<2x128xf32>
    %40 = arith.addf %38, %39 : vector<2x128xf32>
    %41 = math.tanh %19 : vector<2x128xf32>
    %42 = arith.select %30, %41, %19 : vector<2x128xi1>, vector<2x128xf32>
    %43 = arith.select %25, %40, %42 : vector<2x128xi1>, vector<2x128xf32>
    %c0_21 = arith.constant 0 : index
    %c0_22 = arith.constant 0 : index
    %44 = vector.load %arg7[%c0_21, %c0_22] : memref<2x128xf32, #tpu.memory_space<vmem>>, vector<2x128xf32>
    tpu.vector_store %arg7[%c0_21, %c0_22], %43 {strides = array<i32>} : memref<2x128xf32, #tpu.memory_space<vmem>>, vector<2x128xf32>,
    return
  }
}

</mosaic_0001>

<bundles_post_ra>
// kernel: tpu_custom_call.1
= control target key start
LH: loop header
LB: loop body
LE: loop exit
PB: predicated region body
PF: predicated region fallthrough
CT: control target
= control target key end

     0   :  { %12 = vsyncpa [#allocation3], 0  ;;  %s723_s0 = inlined_call_operand.hbm [shape: f32[2,32], index: 0, kind: input, shape index: {}]   ;;  %s724_s1 = inlined_call_operand.hbm [shape: f32[32,224], index: 1, kind: input, shape index: {}]   ;;  %s725_s2 = inlined_call_operand.vmem [shape: f32[1,224], index: 2, kind: input, shape index: {}]   ;;  %s726_s3 = inlined_call_operand.hbm [shape: f32[224,112], index: 3, kind: input, shape index: {}]   ;;  %s727_s4 = inlined_call_operand.vmem [shape: f32[1,112], index: 4, kind: input, shape index: {}]   ;;  %s728_s5 = inlined_call_operand.hbm [shape: f32[112,128], index: 5, kind: input, shape index: {}]   ;;  %s729_s6 = inlined_call_operand.vmem [shape: f32[1,128], index: 6, kind: input, shape index: {}]   ;;  %s730_s7 = inlined_call_operand.hbm [shape: f32[2,128], index: 7, kind: output, shape index: {}]  }
   0x1   :  { %13 = vsyncpa [#allocation6], 0 }
   0x2   :  { %14 = vsyncpa [#allocation9], 0 }
   0x3   :  { %15 = vsyncpa [#allocation4], 0  ;;  %s604_s24 = smov [#allocation5]  }
   0x4   :  { %s31_s25 = sshll.u32 %s604_s24, 4  ;;  %s32_s25 = int_to_ptr.vmem [resolvable:$true] %s31_s25 }
   0x5   :  { %s504_s26 = scalar_lea.vmem %s32_s25, 1024  ;;  %p509_p1 = scmp.lt.s32.totalorder %s32_s25, %s32_s25 }
   0x6   :  { %p505_p0 = scmp.ne.s32.totalorder %s32_s25, %s504_s26  ;;  %p510_p2 = scmp.lt.s32.totalorder %s504_s26, %s504_s26 }
   0x8   :  { %p511_p3 = por %p510_p2, %p509_p1 }
   0xa   :  { %p512_p4 = pnand %p511_p3, %p505_p0 }
   0xc   :  { %515 = shalt.err (!%p512_p4)
}
   0xd   :  { %s605_s27 = smov 256   ;;  %s606_s28 = smov 16  }
   0xe   :  { %37 = dma.hbm_to_vmem [thread:$0]  %s724_s1, 1024, %s32_s25, [#allocation6], %s605_s27, %s605_s27, %s606_s28  }
   0xf   :  { %s607_s8 = smov [#allocation2]   ;;  %s608_s10 = smov [#allocation7]  }
  0x10   :  { %s22_s9 = sshll.u32 %s607_s8, 4  ;;  %s45_s11 = sshll.u32 %s608_s10, 4  ;;  %s23_s9 = int_to_ptr.vmem [resolvable:$true] %s22_s9  ;;  %s46_s11 = int_to_ptr.vmem [resolvable:$true] %s45_s11 }
  0x11   :  { %s524_s12 = scalar_lea.vmem %s23_s9, 32  ;;  %p529_p6 = scmp.lt.s32.totalorder %s23_s9, %s23_s9 }
  0x12   :  { %p525_p5 = scmp.ne.s32.totalorder %s23_s9, %s524_s12  ;;  %p530_p7 = scmp.lt.s32.totalorder %s524_s12, %s524_s12 }
  0x14   :  { %p531_p8 = por %p530_p7, %p529_p6 }
  0x16   :  { %p532_p9 = pnand %p531_p8, %p525_p5 }
  0x18   :  { %535 = shalt.err (!%p532_p9)
}
  0x19   :  { %25 = dma.hbm_to_vmem [thread:$0]  %s723_s0, 32, %s23_s9, [#allocation3]  }
  0x1a   :  { %s544_s15 = scalar_lea.vmem %s46_s11, 3584  ;;  %p549_p11 = scmp.lt.s32.totalorder %s46_s11, %s46_s11 }
  0x1b   :  { %p545_p10 = scmp.ne.s32.totalorder %s46_s11, %s544_s15  ;;  %p550_p12 = scmp.lt.s32.totalorder %s544_s15, %s544_s15 }
  0x1d   :  { %p551_p13 = por %p550_p12, %p549_p11 }
  0x1f   :  { %p552_p0 = pnand %p551_p13, %p545_p10 }
  0x21   :  { %555 = shalt.err (!%p552_p0)
}
  0x22   :  { %s609_s1 = smov 128   ;;  %s610_s16 = smov 8  }
  0x23   :  { %51 = dma.hbm_to_vmem [thread:$0]  %s726_s3, 3584, %s46_s11, [#allocation6], %s609_s1, %s609_s1, %s610_s16  }
  0x24   :  { %s611_s19 = smov [#allocation8]  }
  0x25   :  { %s59_s20 = sshll.u32 %s611_s19, 4  ;;  %s60_s20 = int_to_ptr.vmem [resolvable:$true] %s59_s20 }
  0x26   :  { %s564_s21 = scalar_lea.vmem %s60_s20, 1792  ;;  %p569_p2 = scmp.lt.s32.totalorder %s60_s20, %s60_s20 }
  0x27   :  { %p565_p1 = scmp.ne.s32.totalorder %s60_s20, %s564_s21  ;;  %p570_p3 = scmp.lt.s32.totalorder %s564_s21, %s564_s21 }
  0x29   :  { %p571_p4 = por %p570_p3, %p569_p2 }
  0x2b   :  { %p572_p5 = pnand %p571_p4, %p565_p1 }
  0x2d   :  { %575 = shalt.err (!%p572_p5)
}
  0x2e   :  { %65 = dma.hbm_to_vmem [thread:$0]  %s728_s5, 1792, %s60_s20, [#allocation9], %s609_s1, %s609_s1, %s610_s16  }
  0x2f   :  { %596 = dma.done.wait [#allocation3], 32  }
  0x30   :  { %597 = vsyncadd [#allocation3], 4294967264 }
  0x31   :  { %598 = dma.done.wait [#allocation6], 4608  }
  0x32   :  { %599 = vsyncadd [#allocation6], 4294962688 }
  0x33   :  { %600 = dma.done.wait [#allocation9], 1792  }
  0x34   :  { %601 = vsyncadd [#allocation9], 4294965504  ;;  %v612_v0 = vmov 0.0   ;;  %v88_v1 = vld [vmem:[#allocation5 + $0x38] sm:$0xff]  ;;  %v87_v2 = vld [vmem:[#allocation5 + $0x30] sm:$0xff]  ;;  %vm101_vm0 = vcmask 261120   ;;  %v91_v49 = vlaneseq }
  0x35   :  { %169 = vmatprep.mubr.f32.mxu0 %v612_v0  ;;  %217 = vmatprep.subr.mxu1 %v612_v0  ;;  %v86_v3 = vld [vmem:[#allocation5 + $0x28] sm:$0xff]  ;;  %v85_v4 = vld [vmem:[#allocation5 + $0x20] sm:$0xff]  ;;  %v84_v5 = vld [vmem:[#allocation5 + $0x18] sm:$0xff]  ;;  %vm213_vm1 = vcmask 785408   ;;  %vm613_vm2 = vmmov 0   ;;  %vm309_vm3 = vcmask 916480  }
  0x36   :  { %129 = vmatprep.subr.mxu0 %v88_v1  ;;  %v83_v6 = vld [vmem:[#allocation5 + $0x10] sm:$0xff]  ;;  %v193_v7 = vld [vmem:[#allocation7 + $0x78] sm:$0xff]  ;;  %v82_v9 = vld [vmem:[#allocation5 + $0x8] sm:$0xff]  ;;  %v92_v50 = vshrl.u32 %v91_v49, 7 }
  0x37   :  { %130 = vmatpush1.msra.mxu0 %v87_v2  ;;  %v192_v8 = vld [vmem:[#allocation7 + $0x70] sm:$0xff]  ;;  %218 = vmatpush1.msra.mxu1 %v193_v7  ;;  %v81_v10 = vld [vmem:[#allocation5] sm:$0xff]  ;;  %v191_v11 = vld [vmem:[#allocation7 + $0x68] sm:$0xff] }
  0x38   :  { %131 = vmatprep.subr.mxu0 %v86_v3  ;;  %219 = vmatprep.subr.mxu1 %v612_v0  ;;  %v80_v12 = vld [vmem:[#allocation2] sm:$0x3]  ;;  %v190_v13 = vld [vmem:[#allocation7 + $0x60] sm:$0xff]  ;;  %v188_v15 = vld [vmem:[#allocation7 + $0x50] sm:$0xff]  ;;  %v93_v51 = vsub.s32 0, %v92_v50  ;;  %v97_v53 = vsub.s32 1, %v92_v50 }
  0x39   :  { %132 = vmatpush1.msra.mxu0 %v85_v4  ;;  %220 = vmatpush1.msra.mxu1 %v192_v8  ;;  %v189_v14 = vld [vmem:[#allocation7 + $0x58] sm:$0xff]  ;;  %v187_v16 = vld [vmem:[#allocation7 + $0x48] sm:$0xff]  ;;  %v186_v17 = vld [vmem:[#allocation7 + $0x40] sm:$0xff] }
  0x3a   :  { %133 = vmatprep.subr.mxu0 %v84_v5  ;;  %221 = vmatprep.subr.mxu1 %v612_v0  ;;  %v185_v18 = vld [vmem:[#allocation7 + $0x38] sm:$0xff]  ;;  %v184_v19 = vld [vmem:[#allocation7 + $0x30] sm:$0xff]  ;;  %v183_v20 = vld [vmem:[#allocation7 + $0x28] sm:$0xff] }
  0x3b   :  { %134 = vmatpush1.msra.mxu0 %v83_v6  ;;  %222 = vmatpush1.msra.mxu1 %v191_v11  ;;  %v182_v21 = vld [vmem:[#allocation7 + $0x20] sm:$0xff]  ;;  %v181_v22 = vld [vmem:[#allocation7 + $0x18] sm:$0xff]  ;;  %v180_v23 = vld [vmem:[#allocation7 + $0x10] sm:$0xff] }
  0x3c   :  { %135 = vmatprep.subr.mxu0 %v82_v9  ;;  %223 = vmatprep.subr.mxu1 %v612_v0  ;;  %v179_v24 = vld [vmem:[#allocation7 + $0x8] sm:$0xff]  ;;  %v178_v25 = vld [vmem:[#allocation7] sm:$0xff]  ;;  %v205_v26 = vld [vmem:[#allocation7 + $0xd8] sm:$0xff] }
  0x3d   :  { %136 = vmatpush1.msra.mxu0 %v81_v10  ;;  %224 = vmatpush1.msra.mxu1 %v190_v13  ;;  %v204_v27 = vld [vmem:[#allocation7 + $0xd0] sm:$0xff]  ;;  %v203_v28 = vld [vmem:[#allocation7 + $0xc8] sm:$0xff]  ;;  %v202_v29 = vld [vmem:[#allocation7 + $0xc0] sm:$0xff] }
  0x3e   :  { %428 = vmatmul.mubr.msk.f32.vlgmr.msra.gmra.mxu0 %vm101_vm0, %v80_v12  ;;  %448 = vmatprep.subr.mxu0 %v612_v0  ;;  %v201_v30 = vld [vmem:[#allocation7 + $0xb8] sm:$0xff]  ;;  %v200_v31 = vld [vmem:[#allocation7 + $0xb0] sm:$0xff]  ;;  %v199_v32 = vld [vmem:[#allocation7 + $0xa8] sm:$0xff] }
  0x3f   :  { %225 = vmatprep.subr.mxu1 %v612_v0  ;;  %v198_v33 = vld [vmem:[#allocation7 + $0xa0] sm:$0xff]  ;;  %v197_v34 = vld [vmem:[#allocation7 + $0x98] sm:$0xff]  ;;  %v196_v35 = vld [vmem:[#allocation7 + $0x90] sm:$0xff]  ;;  %476 = vmatprep.mubr.msk.f32.mxu0 %vm613_vm2, %v612_v0 }
  0x40   :  { %226 = vmatpush1.msra.mxu1 %v189_v14  ;;  %v195_v36 = vld [vmem:[#allocation7 + $0x88] sm:$0xff]  ;;  %v194_v37 = vld [vmem:[#allocation7 + $0x80] sm:$0xff]  ;;  %v299_v40 = vld [vmem:[#allocation8 + $0x58] sm:$0xff] }
  0x41   :  { %227 = vmatprep.subr.mxu1 %v612_v0  ;;  %v301_v38 = vld [vmem:[#allocation8 + $0x68] sm:$0xff]  ;;  %v300_v39 = vld [vmem:[#allocation8 + $0x60] sm:$0xff]  ;;  %v298_v41 = vld [vmem:[#allocation8 + $0x50] sm:$0xff] }
  0x42   :  { %228 = vmatpush1.msra.mxu1 %v188_v15  ;;  %449 = vmatpush3.msra.mxu0 %v301_v38  ;;  %v297_v42 = vld [vmem:[#allocation8 + $0x48] sm:$0xff]  ;;  %v296_v43 = vld [vmem:[#allocation8 + $0x40] sm:$0xff]  ;;  %v295_v44 = vld [vmem:[#allocation8 + $0x38] sm:$0xff] }
  0x43   :  { %229 = vmatprep.subr.mxu1 %v612_v0  ;;  %450 = vmatprep.subr.mxu0 %v612_v0  ;;  %v294_v45 = vld [vmem:[#allocation8 + $0x30] sm:$0xff]  ;;  %v293_v46 = vld [vmem:[#allocation8 + $0x28] sm:$0xff]  ;;  %v292_v47 = vld [vmem:[#allocation8 + $0x20] sm:$0xff] }
  0x44   :  { %230 = vmatpush1.msra.mxu1 %v187_v16  ;;  %451 = vmatpush3.msra.mxu0 %v300_v39  ;;  %v291_v48 = vld [vmem:[#allocation8 + $0x18] sm:$0xff]  ;;  %v290_v62 = vld [vmem:[#allocation8 + $0x10] sm:$0xff]  ;;  %v289_v63 = vld [vmem:[#allocation8 + $0x8] sm:$0xff]  ;;  %v384_v16 = vand.u32 127, %v91_v49 }
  0x45   :  { %231 = vmatprep.subr.mxu1 %v612_v0  ;;  %452 = vmatprep.subr.mxu0 %v612_v0  ;;  %v89_v52 = vld [vmem:[%s725_s2] sm:$0x3]  ;;  %v288_v1 = vld [vmem:[#allocation8] sm:$0xff] }
  0x46   :  { %232 = vmatpush1.msra.mxu1 %v186_v17  ;;  %453 = vmatpush3.msra.mxu0 %v299_v40  ;;  %v94_v54 = vrot.slane %v89_v52, %v93_v51  ;;  %v98_v55 = vrot.slane %v89_v52, %v97_v53  ;;  %v429_v2 = vld [vmem:[%s727_s4] ss:$0 sm:$0xff]  ;;  %vm388_vm4 = vcmp.ge.s32.totalorder %v384_v16, 12  ;;  %vm389_vm5 = vcmp.lt.s32.totalorder %v384_v16, 15  ;;  %s614_s4 = smov [#allocation10]  }
  0x47   :  { %233 = vmatprep.subr.mxu1 %v612_v0  ;;  %454 = vmatprep.subr.mxu0 %v612_v0  ;;  %v431_v7 = vld [vmem:[%s729_s6] ss:$0 sm:$0xff]  ;;  %vm385_vm6 = vcmp.ge.s32.totalorder %v384_v16, 6  ;;  %vm386_vm7 = vcmp.lt.s32.totalorder %v384_v16, 12  ;;  %vm390_vm9 = vmand %vm388_vm4, %vm389_vm5  ;;  %s417_s6 = sshll.u32 %s614_s4, 4  ;;  %s418_s6 = int_to_ptr.vmem [resolvable:$true] %s417_s6 }
  0x48   :  { %234 = vmatpush1.msra.mxu1 %v185_v18  ;;  %455 = vmatpush3.msra.mxu0 %v298_v41  ;;  %vm387_vm10 = vmand %vm385_vm6, %vm386_vm7  ;;  %s576_s26 = scalar_lea.vmem %s418_s6, 32  ;;  %p581_p7 = scmp.lt.s32.totalorder %s418_s6, %s418_s6 }
  0x49   :  { %235 = vmatprep.subr.mxu1 %v612_v0  ;;  %456 = vmatprep.subr.mxu0 %v612_v0  ;;  %p577_p6 = scmp.ne.s32.totalorder %s418_s6, %s576_s26  ;;  %p582_p8 = scmp.lt.s32.totalorder %s576_s26, %s576_s26 }
  0x4a   :  { %236 = vmatpush1.msra.mxu1 %v184_v19  ;;  %457 = vmatpush3.msra.mxu0 %v297_v42 }
  0x4b   :  { %237 = vmatprep.subr.mxu1 %v612_v0  ;;  %458 = vmatprep.subr.mxu0 %v612_v0  ;;  %p583_p9 = por %p582_p8, %p581_p7 }
  0x4c   :  { %238 = vmatpush1.msra.mxu1 %v183_v20  ;;  %459 = vmatpush3.msra.mxu0 %v296_v43 }
  0x4d   :  { %239 = vmatprep.subr.mxu1 %v612_v0  ;;  %460 = vmatprep.subr.mxu0 %v612_v0  ;;  %p584_p10 = pnand %p583_p9, %p577_p6 }
  0x4e   :  { %240 = vmatpush1.msra.mxu1 %v182_v21  ;;  %461 = vmatpush3.msra.mxu0 %v295_v44 }
  0x4f   :  { %241 = vmatprep.subr.mxu1 %v612_v0  ;;  %462 = vmatprep.subr.mxu0 %v612_v0 }
  0x50   :  { %242 = vmatpush1.msra.mxu1 %v181_v22  ;;  %463 = vmatpush3.msra.mxu0 %v294_v45 }
  0x51   :  { %243 = vmatprep.subr.mxu1 %v612_v0  ;;  %464 = vmatprep.subr.mxu0 %v612_v0 }
  0x52   :  { %244 = vmatpush1.msra.mxu1 %v180_v23  ;;  %465 = vmatpush3.msra.mxu0 %v293_v46 }
  0x53   :  { %245 = vmatprep.subr.mxu1 %v612_v0  ;;  %466 = vmatprep.subr.mxu0 %v612_v0 }
  0x54   :  { %246 = vmatpush1.msra.mxu1 %v179_v24  ;;  %467 = vmatpush3.msra.mxu0 %v292_v47 }
  0x55   :  { %247 = vmatprep.subr.mxu1 %v612_v0  ;;  %468 = vmatprep.subr.mxu0 %v612_v0 }
  0x56   :  { %248 = vmatpush1.msra.mxu1 %v178_v25  ;;  %469 = vmatpush3.msra.mxu0 %v291_v48 }
  0x57   :  { %257 = vmatprep.subr.mxu1 %v612_v0  ;;  %470 = vmatprep.subr.mxu0 %v612_v0 }
  0x58   :  { %258 = vmatpush2.msra.mxu1 %v205_v26  ;;  %471 = vmatpush3.msra.mxu0 %v290_v62 }
  0x59   :  { %259 = vmatprep.subr.mxu1 %v612_v0  ;;  %472 = vmatprep.subr.mxu0 %v612_v0 }
  0x5a   :  { %260 = vmatpush2.msra.mxu1 %v204_v27  ;;  %473 = vmatpush3.msra.mxu0 %v289_v63 }
  0x5b   :  { %261 = vmatprep.subr.mxu1 %v612_v0  ;;  %474 = vmatprep.subr.mxu0 %v612_v0 }
  0x5c   :  { %262 = vmatpush2.msra.mxu1 %v203_v28  ;;  %475 = vmatpush3.msra.mxu0 %v288_v1 }
  0x5d   :  { %263 = vmatprep.subr.mxu1 %v612_v0 }
  0x5e   :  { %264 = vmatpush2.msra.mxu1 %v202_v29 }
  0x5f   :  { %265 = vmatprep.subr.mxu1 %v612_v0 }
  0x60   :  { %266 = vmatpush2.msra.mxu1 %v201_v30 }
  0x61   :  { %267 = vmatprep.subr.mxu1 %v612_v0 }
  0x62   :  { %268 = vmatpush2.msra.mxu1 %v200_v31 }
  0x63   :  { %269 = vmatprep.subr.mxu1 %v612_v0 }
  0x64   :  { %270 = vmatpush2.msra.mxu1 %v199_v32 }
  0x65   :  { %271 = vmatprep.subr.mxu1 %v612_v0 }
  0x66   :  { %272 = vmatpush2.msra.mxu1 %v198_v33 }
  0x67   :  { %273 = vmatprep.subr.mxu1 %v612_v0 }
  0x68   :  { %274 = vmatpush2.msra.mxu1 %v197_v34 }
  0x69   :  { %275 = vmatprep.subr.mxu1 %v612_v0 }
  0x6a   :  { %276 = vmatpush2.msra.mxu1 %v196_v35 }
  0x6b   :  { %277 = vmatprep.subr.mxu1 %v612_v0 }
  0x6c   :  { %278 = vmatpush2.msra.mxu1 %v195_v36 }
  0x6d   :  { %279 = vmatprep.subr.mxu1 %v612_v0 }
  0x6e   :  { %280 = vmatpush2.msra.mxu1 %v194_v37 }
  0xfe   :  { %v171_v56 = vpop.f32.mrf.mxu0 }
  0xff   :  { %v172_v57 = vadd.f32 %v171_v56, %v94_v54 }
 0x100   :  { %v173_v58 = vpop.f32.mrf.mxu0 }
 0x101   :  { %v174_v59 = vadd.f32 %v173_v58, %v98_v55  ;;  %v176_v61 = vmax.f32 %v172_v57, 0.0 }
 0x103   :  { %v177_v60 = vmax.f32 %v174_v59, 0.0 }
 0x105   :  { %430 = vmatprep.mubr.msk.f32.mxu1 %vm213_vm1, %v177_v60 }
 0x106   :  { %282 = vmatmul.mubr.f32.vlgmr.msra.gmra.mxu1 %v176_v61 }
 0x1c6   :  { %v283_v3 = vpop.f32.mrf.mxu1 }
 0x1c7   :  { %v284_v4 = vadd.f32 %v429_v2, %v283_v3 }
 0x1c8   :  { %v285_v5 = vpop.f32.mrf.mxu1 }
 0x1c9   :  { %v287_v6 = vmax.f32 %v284_v4, 0.0 }
 0x1cb   :  { %477 = vmatmul.mubr.msk.f32.vlgmr.msra.gmra.mxu0 %vm309_vm3, %v287_v6 }
 0x28b   :  { %v379_v8 = vpop.f32.mrf.mxu0 }
 0x28c   :  { %v380_v9 = vadd.f32 %v431_v7, %v379_v8 }
 0x28d   :  { %v478_v10 = vpop.f32.mrf.mxu0 }
 0x28e   :  { %v392_v11 = vand.u32 2147483647, %v380_v9  ;;  %v391_v22 = vmax.f32 %v380_v9, 0.0 }
 0x290   :  { %v393_v12 = vsub.f32 0.0, %v392_v11 }
 0x292   :  { %v394_v0 = vmul.f32 1.442695, %v393_v12 }
 0x294   :  { %490 = vpow2.f32 %v394_v0 }
 0x2a1   :  { %v491_v13 = vpop.eup %490 }
 0x2a2   :  { %v396_v14 = vadd.f32 1.0, %v491_v13  ;;  %v399_v15 = vmul.f32 -0.5, %v491_v13  ;;  %v402_v18 = vand.u32 2147483647, %v491_v13 }
 0x2a4   :  { %492 = vlog2.f32 %v396_v14  ;;  %v400_v17 = vadd.f32 1.0, %v399_v15  ;;  %vm403_vm8 = vcmp.lt.f32.partialorder %v402_v18, 0.0004427343 }
 0x2a5   :  { %494 = vtanh.f32 %v380_v9 }
 0x2a6   :  { %v401_v21 = vmul.f32 %v491_v13, %v400_v17 }
 0x2b1   :  { %v493_v19 = vpop.eup %492 }
 0x2b2   :  { %v398_v20 = vmul.f32 0.6931472, %v493_v19  ;;  %v495_v24 = vpop.eup %494 }
 0x2b3   :  { %v408_v27 = vsel %vm390_vm9, %v495_v24, %v380_v9 }
 0x2b4   :  { %v404_v23 = vsel %vm403_vm8, %v401_v21, %v398_v20 }
 0x2b5   :  { %v405_v25 = vadd.f32 %v404_v23, %v391_v22 }
 0x2b7   :  { %v406_v26 = vadd.f32 1e-06, %v405_v25 }
 0x2b9   :  { %v409_v28 = vsel %vm387_vm10, %v406_v26, %v408_v27 }
 0x2ba   :  { %410 = vst [vmem:[#allocation10] sm:$0x3] %v409_v28 }
 0x2bb   :  { %587 = shalt.err (!%p584_p10)
}
 0x2bc   :  { %420 = dma.vmem_to_hbm [thread:$0]  %s418_s6, 32, %s730_s7, [#allocation4]  }
 0x2bd   :  { %602 = dma.done.wait [#allocation4], 32  }
 0x2be   :  { %603 = vsyncadd [#allocation4], 4294967264 }
 0x2bf   :  { %424 = vsyncpa [#allocation3], 1 }
 0x2c0   :  { %425 = vsyncpa [#allocation6], 1 }
 0x2c1   :  { %426 = vsyncpa [#allocation9], 1 }
 0x2c2   :  { %427 = vsyncpa [#allocation4], 1 }

</bundles_post_ra>
